<compile_context>
chip_gen: v6e
topology: v6e:2x2x1
jax: 0.10.0
libtpu: 0.0.40
codegen_flags: <defaults>
</compile_context>

<pallas_src>
import functools

import jax
import jax.numpy as jnp
from jax.experimental import pallas as pl
from jax.experimental.pallas import tpu as pltpu


def _round_up(n: int, m: int) -> int:
    return ((n + m - 1) // m) * m


def _tensorcores_per_chip() -> int:
    """2 TensorCores per chip on v7x, 1 on v5e/v6e (and anything unknown)."""
    try:
        kind = (jax.devices()[0].device_kind or "").lower()
    except Exception:
        return 1
    return 2 if ("v7" in kind or "tpu7" in kind or "7x" in kind) else 1


def fcbody_kernel(x_ref, w1_ref, b1_ref, w2_ref, b2_ref, o_ref):
    # Layer 1: relu(x @ W1 + b1) -- MXU matmul with f32 accumulate; bias + ReLU
    # epilogue stays f32 on the VPU (portable: v5e VPU has no bf16).
    x = x_ref[...].astype(w1_ref.dtype)
    h = jnp.dot(x, w1_ref[...], preferred_element_type=jnp.float32)
    h = jnp.maximum(h + b1_ref[...], 0.0)
    # Layer 2: relu(h @ W2 + b2)
    y = jnp.dot(h.astype(w2_ref.dtype), w2_ref[...],
                preferred_element_type=jnp.float32)
    y = jnp.maximum(y + b2_ref[...], 0.0)
    o_ref[...] = y.astype(o_ref.dtype)


@functools.partial(jax.jit, static_argnames=("block_b", "out_dtype"))
def fcbody_forward(x, w1, b1, w2, b2, *, block_b=None, out_dtype=None):
    """Fused FCBody forward: relu(relu(x@W1+b1)@W2+b2).

    - Batch is tiled with a 1-D grid; weights/biases use constant index_maps so
      they stay VMEM-resident (DMA'd once) while activation/output tiles are
      double-buffered.
    - Feature dims are used unpadded: block dims equal the full array dims, so
      no wrapper pad/slice HLOs and minimal DMA bytes.
    - Weights may be pre-cast (once) to bf16 via prepare_fcbody_params; the
      accumulate and bias/ReLU epilogue remain f32.
    """
    B, D = x.shape
    Dw, H1 = w1.shape
    H1w, H2 = w2.shape
    assert Dw == D and H1w == H1, "weight shapes must be (D,H1) and (H1,H2)"
    if out_dtype is None:
        out_dtype = x.dtype
    # No-ops when params were prepared via prepare_fcbody_params.
    b1 = jnp.asarray(b1, jnp.float32).reshape(1, H1)
    b2 = jnp.asarray(b2, jnp.float32).reshape(1, H2)

    # Sublane multiple for the batch-tiled buffers (x tile / out tile).
    sub = 16 if (jnp.dtype(x.dtype).itemsize < 4
                 or jnp.dtype(out_dtype).itemsize < 4) else 8

    # Batch tile: one step per TensorCore (>=2 on v7x so both TCs work),
    # capped at 1024 rows/step; explicit block_b is rounded to a legal tile.
    if block_b is None:
        tb = -(-B // _tensorcores_per_chip())
        tb = min(tb, 1024)
    else:
        tb = min(int(block_b), B)
    tb = _round_up(max(tb, 1), sub)

    if tb >= B:
        # Single step: block equals the full batch dim -> legal even when B is
        # not a sublane multiple, and no padding / output slice needed.
        TB, Bp, x_in = B, B, x
    else:
        TB = tb
        Bp = _round_up(B, TB)
        x_in = x if Bp == B else jnp.pad(x, ((0, Bp - B), (0, 0)))
        # Padded rows compute relu(bias) != 0 but are sliced off below.

    grid = (Bp // TB,)

    # VMEM budget: double-buffered x/out tiles + resident weights/biases +
    # f32 intermediates; clamp to v7x's 64 MiB physical VMEM.
    need = (2 * TB * D * x.dtype.itemsize
            + 2 * TB * H2 * jnp.dtype(out_dtype).itemsize
            + D * H1 * w1.dtype.itemsize
            + H1 * H2 * w2.dtype.itemsize
            + 4 * (H1 + H2)
            + 4 * TB * (H1 + H2))
    vmem_limit = int(min(max(2 * need, 32 * 1024 * 1024), 64 * 1024 * 1024))
    # TODO(synk): if hidden_units grow so `need` itself nears 64 MiB, shrink TB
    # or stop keeping both weights resident instead of relying on the clamp.

    out = pl.pallas_call(
        fcbody_kernel,
        out_shape=jax.ShapeDtypeStruct((Bp, H2), out_dtype),
        grid=grid,
        in_specs=[
            pl.BlockSpec((TB, D), lambda i: (i, 0)),    # x: tiled over batch
            pl.BlockSpec((D, H1), lambda i: (0, 0)),    # W1: VMEM-resident
            pl.BlockSpec((1, H1), lambda i: (0, 0)),    # b1: resident
            pl.BlockSpec((H1, H2), lambda i: (0, 0)),   # W2: resident
            pl.BlockSpec((1, H2), lambda i: (0, 0)),    # b2: resident
        ],
        out_specs=pl.BlockSpec((TB, H2), lambda i: (i, 0)),
        compiler_params=pltpu.CompilerParams(
            dimension_semantics=("parallel",),          # megacore on v7x
            vmem_limit_bytes=vmem_limit,
        ),
    )(x_in, w1, b1, w2, b2)

    return out if Bp == B else out[:B]


def init_fcbody_params(key, state_dim, hidden_units=(64, 64)):
    """Deterministic synthetic init (normal / sqrt(fan_in), zero bias),
    nn.Linear(dim_in, dim_out) shapes stored transposed as (in, out)."""
    dims = (state_dim,) + tuple(hidden_units)
    params = []
    for dim_in, dim_out in zip(dims[:-1], dims[1:]):
        key, wk = jax.random.split(key)
        w = jax.random.normal(wk, (dim_in, dim_out), jnp.float32) / jnp.sqrt(dim_in)
        b = jnp.zeros((dim_out,), jnp.float32)
        params.append((w, b))
    return params


def prepare_fcbody_params(params, compute_dtype=jnp.float32):
    """One-time parameter prep, hoisted out of the per-forward path: cast
    weights to the MXU input dtype (bf16 OK on v5e/v6e/v7x) and keep biases as
    f32 row vectors for the VPU epilogue."""
    return [(jnp.asarray(w, compute_dtype),
             jnp.asarray(b, jnp.float32).reshape(1, -1))
            for w, b in params]


if __name__ == "__main__":
    key = jax.random.PRNGKey(0)
    # Small shapes matching FCBody defaults: state_dim=16, hidden_units=(64, 64).
    batch, state_dim, hidden = 64, 16, (64, 64)

    key, xk = jax.random.split(key)
    x = jax.random.normal(xk, (batch, state_dim), jnp.float32)
    params = init_fcbody_params(key, state_dim, hidden)

    # Pure-JAX reference: FCBody applies the activation after every layer.
    (w1r, b1r), (w2r, b2r) = params
    ref = jnp.maximum(jnp.maximum(x @ w1r + b1r, 0.0) @ w2r + b2r, 0.0)

    # f32 MXU path, auto batch tile (1 step on v5e/v6e, 2 on v7x).
    (w1, b1), (w2, b2) = prepare_fcbody_params(params, jnp.float32)
    out = jax.block_until_ready(fcbody_forward(x, w1, b1, w2, b2))
    assert out.shape == (batch, hidden[-1])
    assert jnp.allclose(out, ref, atol=1e-5, rtol=1e-5)

    # Explicit multi-step grid with a ragged batch (exercises pad + slice path).
    x_odd = x[:50]
    out_odd = jax.block_until_ready(
        fcbody_forward(x_odd, w1, b1, w2, b2, block_b=16))
    assert out_odd.shape == (50, hidden[-1])
    assert jnp.allclose(out_odd, ref[:50], atol=1e-5, rtol=1e-5)

    # bf16 MXU inputs (prepared once; valid on all TPU gens), f32 accumulate.
    # Note: x and the layer-1 activation are each cast to bf16 before their
    # matmul, so expect bf16-level error; tolerance reflects that.
    (w1b, b1b), (w2b, b2b) = prepare_fcbody_params(params, jnp.bfloat16)
    out_bf16 = jax.block_until_ready(fcbody_forward(x, w1b, b1b, w2b, b2b))
    assert out_bf16.shape == (batch, hidden[-1])
    assert jnp.allclose(out_bf16, ref, atol=1e-1, rtol=1e-1)

    print("KERNEL_OK")
</pallas_src>

<mosaic_0001>
module attributes {stable_mosaic.version = 11 : i64} {
  func.func @fcbody_kernel(%arg0: i32, %arg1: memref<64x16xf32, #tpu.memory_space<vmem>>, %arg2: memref<16x64xf32, #tpu.memory_space<vmem>>, %arg3: memref<1x64xf32, #tpu.memory_space<vmem>>, %arg4: memref<64x64xf32, #tpu.memory_space<vmem>>, %arg5: memref<1x64xf32, #tpu.memory_space<vmem>>, %arg6: memref<64x64xf32, #tpu.memory_space<vmem>>) attributes {dimension_semantics = [#tpu.dimension_semantics<parallel>], iteration_bounds = array<i64: 1>, scalar_prefetch = 0 : i64, scratch_operands = 0 : i64, tpu.core_type = #tpu.core_type<tc>, window_params = [{transform_indices = @transform_0, window_bounds = array<i64: 64, 16>}, {pipeline_mode = #tpu.pipeline_mode<synchronous>, transform_indices = @transform_1, window_bounds = array<i64: 16, 64>}, {pipeline_mode = #tpu.pipeline_mode<synchronous>, transform_indices = @transform_2, window_bounds = array<i64: 1, 64>}, {pipeline_mode = #tpu.pipeline_mode<synchronous>, transform_indices = @transform_3, window_bounds = array<i64: 64, 64>}, {pipeline_mode = #tpu.pipeline_mode<synchronous>, transform_indices = @transform_4, window_bounds = array<i64: 1, 64>}, {transform_indices = @transform_5, window_bounds = array<i64: 64, 64>}]} {
    %c0 = arith.constant 0 : index
    %c0_0 = arith.constant 0 : index
    %0 = vector.load %arg1[%c0, %c0_0] : memref<64x16xf32, #tpu.memory_space<vmem>>, vector<64x16xf32>
    %c0_1 = arith.constant 0 : index
    %c0_2 = arith.constant 0 : index
    %1 = vector.load %arg2[%c0_1, %c0_2] : memref<16x64xf32, #tpu.memory_space<vmem>>, vector<16x64xf32>
    %cst = arith.constant dense<0.000000e+00> : vector<64x64xf32>
    %2 = tpu.matmul %0, %1, %cst {dimension_numbers = #tpu.dot_dimension_numbers<[1], [0], [0], [1], [0, 0, 1, 1], [], []>} : vector<64x16xf32>, vector<16x64xf32>, vector<64x64xf32> -> vector<64x64xf32>
    %c0_3 = arith.constant 0 : index
    %c0_4 = arith.constant 0 : index
    %3 = vector.load %arg3[%c0_3, %c0_4] : memref<1x64xf32, #tpu.memory_space<vmem>>, vector<1x64xf32>
    %4 = vector.broadcast %3 : vector<1x64xf32> to vector<64x64xf32>
    %5 = arith.addf %2, %4 : vector<64x64xf32>
    %cst_5 = arith.constant 0.000000e+00 : f32
    %6 = vector.broadcast %cst_5 : f32 to vector<64x64xf32>
    %7 = arith.maximumf %5, %6 : vector<64x64xf32>
    %c0_6 = arith.constant 0 : index
    %c0_7 = arith.constant 0 : index
    %8 = vector.load %arg4[%c0_6, %c0_7] : memref<64x64xf32, #tpu.memory_space<vmem>>, vector<64x64xf32>
    %cst_8 = arith.constant dense<0.000000e+00> : vector<64x64xf32>
    %9 = tpu.matmul %7, %8, %cst_8 {dimension_numbers = #tpu.dot_dimension_numbers<[1], [0], [0], [1], [0, 0, 1, 1], [], []>} : vector<64x64xf32>, vector<64x64xf32>, vector<64x64xf32> -> vector<64x64xf32>
    %c0_9 = arith.constant 0 : index
    %c0_10 = arith.constant 0 : index
    %10 = vector.load %arg5[%c0_9, %c0_10] : memref<1x64xf32, #tpu.memory_space<vmem>>, vector<1x64xf32>
    %11 = vector.broadcast %10 : vector<1x64xf32> to vector<64x64xf32>
    %12 = arith.addf %9, %11 : vector<64x64xf32>
    %cst_11 = arith.constant 0.000000e+00 : f32
    %13 = vector.broadcast %cst_11 : f32 to vector<64x64xf32>
    %14 = arith.maximumf %12, %13 : vector<64x64xf32>
    %c0_12 = arith.constant 0 : index
    %c0_13 = arith.constant 0 : index
    %15 = vector.load %arg6[%c0_12, %c0_13] : memref<64x64xf32, #tpu.memory_space<vmem>>, vector<64x64xf32>
    tpu.vector_store %arg6[%c0_12, %c0_13], %14 {strides = array<i32>} : memref<64x64xf32, #tpu.memory_space<vmem>>, vector<64x64xf32>,
    return
  }
  func.func @transform_0(%arg0: i32) -> (i32, i32) {
    %c0_i32 = arith.constant 0 : i32
    %c0_i32_0 = arith.constant 0 : i32
    return %arg0, %c0_i32 : i32, i32
  }
  func.func @transform_1(%arg0: i32) -> (i32, i32) {
    %c0_i32 = arith.constant 0 : i32
    %c0_i32_0 = arith.constant 0 : i32
    %c0_i32_1 = arith.constant 0 : i32
    return %c0_i32, %c0_i32_0 : i32, i32
  }
  func.func @transform_2(%arg0: i32) -> (i32, i32) {
    %c0_i32 = arith.constant 0 : i32
    %c0_i32_0 = arith.constant 0 : i32
    %c0_i32_1 = arith.constant 0 : i32
    return %c0_i32, %c0_i32_0 : i32, i32
  }
  func.func @transform_3(%arg0: i32) -> (i32, i32) {
    %c0_i32 = arith.constant 0 : i32
    %c0_i32_0 = arith.constant 0 : i32
    %c0_i32_1 = arith.constant 0 : i32
    return %c0_i32, %c0_i32_0 : i32, i32
  }
  func.func @transform_4(%arg0: i32) -> (i32, i32) {
    %c0_i32 = arith.constant 0 : i32
    %c0_i32_0 = arith.constant 0 : i32
    %c0_i32_1 = arith.constant 0 : i32
    return %c0_i32, %c0_i32_0 : i32, i32
  }
  func.func @transform_5(%arg0: i32) -> (i32, i32) {
    %c0_i32 = arith.constant 0 : i32
    %c0_i32_0 = arith.constant 0 : i32
    return %arg0, %c0_i32 : i32, i32
  }
}

</mosaic_0001>

<bundles_post_ra>
// kernel: fcbody_forward.1
= control target key start
LH: loop header
LB: loop body
LE: loop exit
PB: predicated region body
PF: predicated region fallthrough
CT: control target
= control target key end

     0   :  { %vm38_vm0 = vcmask 130048   ;;  %s602_s0 = inlined_call_operand.vmem [shape: f32[64,16], index: 0, kind: input, shape index: {}]   ;;  %s603_s1 = inlined_call_operand.vmem [shape: f32[16,64], index: 1, kind: input, shape index: {}]   ;;  %s604_s2 = inlined_call_operand.vmem [shape: f32[1,64], index: 2, kind: input, shape index: {}]   ;;  %s605_s3 = inlined_call_operand.vmem [shape: f32[64,64], index: 3, kind: input, shape index: {}]   ;;  %s606_s4 = inlined_call_operand.vmem [shape: f32[1,64], index: 4, kind: input, shape index: {}]   ;;  %s607_s5 = inlined_call_operand.hbm [shape: f32[64,64], index: 5, kind: output, shape index: {}]  }
   0x1   :  { %v30_v0 = vld [vmem:[%s603_s1 + $0x8] sm:$0xff]  ;;  %v29_v1 = vld [vmem:[%s603_s1] sm:$0xff]  ;;  %v23_v4 = vld [vmem:[%s602_s0 + $0x10] sm:$0xff] }
   0x2   :  { %v21_v2 = vld [vmem:[%s602_s0] sm:$0xff]  ;;  %397 = vmatprep.subr.mxu0 %v30_v0  ;;  %v22_v3 = vld [vmem:[%s602_s0 + $0x8] sm:$0xff]  ;;  %v183_v5 = vld [vmem:[%s605_s3 + $0x38] sm:$0xff] }
   0x3   :  { %401 = vmatprep.mubr.msk.f32.mxu0 %vm38_vm0, %v21_v2  ;;  %398 = vmatpush3.msra.mxu0 %v30_v0  ;;  %v182_v6 = vld [vmem:[%s605_s3 + $0x30] sm:$0xff] }
   0x4   :  { %399 = vmatprep.subr.mxu0 %v29_v1  ;;  %441 = vmatprep.subr.mxu1 %v183_v5 }
   0x5   :  { %400 = vmatpush3.msra.mxu0 %v29_v1 }
   0x6   :  { %10 = vsyncpa [#allocation3], 0  ;;  %402 = vmatmul.mubr.msk.f32.vlgmr.msra.gmra.mxu0 %vm38_vm0, %v22_v3  ;;  %413 = vmatprep.subr.mxu0 %v183_v5  ;;  %v24_v7 = vld [vmem:[%s602_s0 + $0x18] sm:$0xff]  ;;  %v181_v8 = vld [vmem:[%s605_s3 + $0x28] sm:$0xff]  ;;  %vm191_vm1 = vcmask 523264  }
   0x7   :  { %404 = vmatprep.mubr.msk.f32.mxu0 %vm38_vm0, %v23_v4  ;;  %414 = vmatpush3.msra.mxu0 %v183_v5  ;;  %v25_v9 = vld [vmem:[%s602_s0 + $0x20] sm:$0xff]  ;;  %v26_v11 = vld [vmem:[%s602_s0 + $0x28] sm:$0xff]  ;;  %v27_v12 = vld [vmem:[%s602_s0 + $0x30] sm:$0xff] }
   0x8   :  { %415 = vmatprep.subr.mxu0 %v182_v6  ;;  %449 = vmatpush3.msra.mxu1 %v183_v5  ;;  %v180_v10 = vld [vmem:[%s605_s3 + $0x20] sm:$0xff]  ;;  %v28_v13 = vld [vmem:[%s602_s0 + $0x38] sm:$0xff]  ;;  %v178_v15 = vld [vmem:[%s605_s3 + $0x10] sm:$0xff] }
   0x9   :  { %416 = vmatpush3.msra.mxu0 %v182_v6  ;;  %442 = vmatprep.subr.mxu1 %v182_v6  ;;  %v179_v14 = vld [vmem:[%s605_s3 + $0x18] sm:$0xff]  ;;  %v177_v16 = vld [vmem:[%s605_s3 + $0x8] sm:$0xff]  ;;  %v176_v17 = vld [vmem:[%s605_s3] sm:$0xff] }
   0xa   :  { %405 = vmatmul.mubr.msk.f32.gmra.mxu0 %vm38_vm0, %v24_v7  ;;  %417 = vmatprep.subr.mxu0 %v181_v8  ;;  %v353_v18 = vld [vmem:[%s604_s2] ss:$0 sm:$0xff] }
   0xb   :  { %407 = vmatprep.mubr.msk.f32.mxu0 %vm38_vm0, %v25_v9  ;;  %418 = vmatpush3.msra.mxu0 %v181_v8  ;;  %v362_v43 = vld [vmem:[%s606_s4] ss:$0 sm:$0xff]  ;;  %s482_s4 = smov [#allocation2]  }
   0xc   :  { %419 = vmatprep.subr.mxu0 %v180_v10  ;;  %450 = vmatpush3.msra.mxu1 %v182_v6  ;;  %s342_s1 = sshll.u32 %s482_s4, 4  ;;  %s343_s1 = int_to_ptr.vmem [resolvable:$true] %s342_s1 }
   0xd   :  { %420 = vmatpush3.msra.mxu0 %v180_v10  ;;  %443 = vmatprep.subr.mxu1 %v181_v8  ;;  %s460_s29 = scalar_lea.vmem %s343_s1, 1024  ;;  %p465_p1 = scmp.lt.s32.totalorder %s343_s1, %s343_s1 }
   0xe   :  { %408 = vmatmul.mubr.msk.f32.gmra.mxu0 %vm38_vm0, %v26_v11  ;;  %451 = vmatpush3.msra.mxu1 %v181_v8  ;;  %p461_p0 = scmp.ne.s32.totalorder %s343_s1, %s460_s29  ;;  %p466_p2 = scmp.lt.s32.totalorder %s460_s29, %s460_s29 }
   0xf   :  { %410 = vmatprep.mubr.msk.f32.mxu0 %vm38_vm0, %v27_v12  ;;  %444 = vmatprep.subr.mxu1 %v180_v10 }
  0x10   :  { %452 = vmatpush3.msra.mxu1 %v180_v10  ;;  %421 = vmatprep.subr.mxu0 %v179_v14  ;;  %p467_p3 = por %p466_p2, %p465_p1 }
  0x11   :  { %445 = vmatprep.subr.mxu1 %v179_v14  ;;  %422 = vmatpush3.msra.mxu0 %v179_v14 }
  0x12   :  { %411 = vmatmul.mubr.msk.f32.gmra.mxu0 %vm38_vm0, %v28_v13  ;;  %453 = vmatpush3.msra.mxu1 %v179_v14  ;;  %p468_p4 = pnand %p467_p3, %p461_p0 }
  0x13   :  { %423 = vmatprep.subr.mxu0 %v178_v15  ;;  %446 = vmatprep.subr.mxu1 %v178_v15 }
  0x14   :  { %424 = vmatpush3.msra.mxu0 %v178_v15  ;;  %454 = vmatpush3.msra.mxu1 %v178_v15 }
  0x15   :  { %425 = vmatprep.subr.mxu0 %v177_v16  ;;  %447 = vmatprep.subr.mxu1 %v177_v16 }
  0x16   :  { %426 = vmatpush3.msra.mxu0 %v177_v16  ;;  %455 = vmatpush3.msra.mxu1 %v177_v16 }
  0x17   :  { %427 = vmatprep.subr.mxu0 %v176_v17  ;;  %448 = vmatprep.subr.mxu1 %v176_v17 }
  0x18   :  { %428 = vmatpush3.msra.mxu0 %v176_v17  ;;  %456 = vmatpush3.msra.mxu1 %v176_v17 }
  0xc6   :  { %v403_v19 = vpop.f32.mrf.mxu0 }
  0xc7   :  { %v135_v20 = vadd.f32 %v403_v19, %v353_v18 }
  0xc8   :  { %v129_v21 = vpop.f32.mrf.mxu0 }
  0xc9   :  { %v130_v22 = vadd.f32 %v353_v18, %v129_v21  ;;  %v169_v25 = vmax.f32 %v135_v20, 0.0 }
  0xca   :  { %v406_v23 = vpop.f32.mrf.mxu0 }
  0xcb   :  { %v168_v24 = vmax.f32 %v130_v22, 0.0  ;;  %v145_v26 = vadd.f32 %v406_v23, %v353_v18 }
  0xcc   :  { %v139_v27 = vpop.f32.mrf.mxu0 }
  0xcd   :  { %v140_v28 = vadd.f32 %v353_v18, %v139_v27  ;;  %429 = vmatprep.mubr.msk.f32.mxu0 %vm191_vm1, %v168_v24  ;;  %v171_v31 = vmax.f32 %v145_v26, 0.0 }
  0xce   :  { %v409_v29 = vpop.f32.mrf.mxu0  ;;  %430 = vmatmul.mubr.msk.f32.vlgmr.msra.gmra.mxu0 %vm191_vm1, %v169_v25 }
  0xcf   :  { %v170_v30 = vmax.f32 %v140_v28, 0.0  ;;  %v155_v32 = vadd.f32 %v409_v29, %v353_v18 }
  0xd0   :  { %v149_v33 = vpop.f32.mrf.mxu0 }
  0xd1   :  { %v150_v34 = vadd.f32 %v353_v18, %v149_v33  ;;  %432 = vmatprep.mubr.msk.f32.mxu1 %vm191_vm1, %v170_v30  ;;  %v173_v37 = vmax.f32 %v155_v32, 0.0 }
  0xd2   :  { %v412_v35 = vpop.f32.mrf.mxu0  ;;  %433 = vmatmul.mubr.msk.f32.vlgmr.msra.gmra.mxu1 %vm191_vm1, %v171_v31 }
  0xd3   :  { %v172_v36 = vmax.f32 %v150_v34, 0.0  ;;  %v165_v38 = vadd.f32 %v412_v35, %v353_v18 }
  0xd4   :  { %v159_v39 = vpop.f32.mrf.mxu0 }
  0xd5   :  { %v160_v40 = vadd.f32 %v353_v18, %v159_v39  ;;  %435 = vmatprep.mubr.msk.f32.mxu1 %vm191_vm1, %v172_v36  ;;  %v175_v42 = vmax.f32 %v165_v38, 0.0 }
  0xd6   :  { %436 = vmatmul.mubr.msk.f32.gmra.mxu1 %vm191_vm1, %v173_v37 }
  0xd7   :  { %v174_v41 = vmax.f32 %v160_v40, 0.0 }
  0xd9   :  { %438 = vmatprep.mubr.msk.f32.mxu1 %vm191_vm1, %v174_v41 }
  0xda   :  { %439 = vmatmul.mubr.msk.f32.gmra.mxu1 %vm191_vm1, %v175_v42 }
 0x18e   :  { %v431_v44 = vpop.f32.mrf.mxu0 }
 0x18f   :  { %v288_v45 = vadd.f32 %v431_v44, %v362_v43 }
 0x190   :  { %v282_v46 = vpop.f32.mrf.mxu0 }
 0x191   :  { %v322_v47 = vmax.f32 %v288_v45, 0.0  ;;  %v283_v48 = vadd.f32 %v362_v43, %v282_v46 }
 0x192   :  { %v434_v49 = vpop.f32.mrf.mxu1 }
 0x193   :  { %330 = vst.msk [vmem:[#allocation2 + $0x8] sm:$0xff] %vm191_vm1, %v322_v47  ;;  %v321_v50 = vmax.f32 %v283_v48, 0.0  ;;  %v298_v51 = vadd.f32 %v434_v49, %v362_v43 }
 0x194   :  { %v292_v52 = vpop.f32.mrf.mxu1 }
 0x195   :  { %329 = vst.msk [vmem:[#allocation2] sm:$0xff] %vm191_vm1, %v321_v50  ;;  %v324_v53 = vmax.f32 %v298_v51, 0.0  ;;  %v293_v54 = vadd.f32 %v362_v43, %v292_v52 }
 0x196   :  { %v437_v55 = vpop.f32.mrf.mxu1 }
 0x197   :  { %332 = vst.msk [vmem:[#allocation2 + $0x18] sm:$0xff] %vm191_vm1, %v324_v53  ;;  %v323_v56 = vmax.f32 %v293_v54, 0.0  ;;  %v308_v57 = vadd.f32 %v437_v55, %v362_v43 }
 0x198   :  { %v302_v58 = vpop.f32.mrf.mxu1 }
 0x199   :  { %331 = vst.msk [vmem:[#allocation2 + $0x10] sm:$0xff] %vm191_vm1, %v323_v56  ;;  %v326_v59 = vmax.f32 %v308_v57, 0.0  ;;  %v303_v60 = vadd.f32 %v362_v43, %v302_v58 }
 0x19a   :  { %v440_v61 = vpop.f32.mrf.mxu1 }
 0x19b   :  { %334 = vst.msk [vmem:[#allocation2 + $0x28] sm:$0xff] %vm191_vm1, %v326_v59  ;;  %v325_v62 = vmax.f32 %v303_v60, 0.0  ;;  %v318_v63 = vadd.f32 %v440_v61, %v362_v43 }
 0x19c   :  { %v312_v0 = vpop.f32.mrf.mxu1 }
 0x19d   :  { %333 = vst.msk [vmem:[#allocation2 + $0x20] sm:$0xff] %vm191_vm1, %v325_v62  ;;  %v328_v1 = vmax.f32 %v318_v63, 0.0  ;;  %v313_v2 = vadd.f32 %v362_v43, %v312_v0 }
 0x19f   :  { %336 = vst.msk [vmem:[#allocation2 + $0x38] sm:$0xff] %vm191_vm1, %v328_v1  ;;  %v327_v3 = vmax.f32 %v313_v2, 0.0 }
 0x1a1   :  { %335 = vst.msk [vmem:[#allocation2 + $0x30] sm:$0xff] %vm191_vm1, %v327_v3 }
 0x1a2   :  { %471 = shalt.err (!%p468_p4)
}
 0x1a3   :  { %s483_s30 = smov 128   ;;  %s484_s6 = smov 8  }
 0x1a4   :  { %348 = dma.vmem_to_hbm [thread:$0]  %s343_s1, 1024, %s607_s5, [#allocation3], %s483_s30, %s483_s30, %s484_s6  }
 0x1a5   :  { %480 = dma.done.wait [#allocation3], 1024  }
 0x1a6   :  { %481 = vsyncadd [#allocation3], 4294966272 }
 0x1a7   :  { %352 = vsyncpa [#allocation3], 1 }

</bundles_post_ra>
